<compile_context>
chip_gen: v5e
topology: v5e:2x2
jax: 0.10.0
libtpu: 0.0.40
codegen_flags: <defaults>
</compile_context>

<pallas_src>
import functools

import jax
import jax.numpy as jnp
from jax import lax
from jax.experimental import pallas as pl
from jax.experimental.pallas import tpu as pltpu


def _clip_loss_kernel(zi_t_ref, zj_t_ref, zi_f_ref, zj_f_ref, out_ref,
                      part_ref, tmass_ref, cmax_ref, csum_ref,
                      *, temperature, batch):
    """One row-tile of the fused symmetric CLIP loss.

    zi_t_ref / zj_t_ref : (TQ, D) row tiles of z_i / z_j
    zi_f_ref / zj_f_ref : (B, D)  full (resident) embeddings (RHS of the Grams)
    out_ref             : (1, 1)  SMEM scalar loss (written on the last tile)
    part_ref            : (1, B)  Σ_rows targets * (rowLSM(logits) + logits)
    tmass_ref           : (1, B)  Σ_rows targets        (column target mass)
    cmax_ref / csum_ref : (1, B)  running column max / Σexp of logits (online LSE)
    """
    i = pl.program_id(0)
    nsteps = pl.num_programs(0)
    f32 = jnp.float32
    inv_temp = 1.0 / temperature
    half_temp = 0.5 * temperature

    @pl.when(i == 0)
    def _init():
        zero = jnp.zeros((1, batch), f32)
        part_ref[...] = zero
        tmass_ref[...] = zero
        csum_ref[...] = zero
        cmax_ref[...] = jnp.full((1, batch), -jnp.inf, f32)

    zi_t = zi_t_ref[...]
    zj_t = zj_t_ref[...]
    zi_f = zi_f_ref[...]
    zj_f = zj_f_ref[...]

    dn = (((1,), (1,)), ((), ()))  # contract last dims: A @ B.T, no transpose

    # logits row-block: (TQ, B) = z_i_tile @ z_j.T / temperature
    logits = lax.dot_general(zi_t, zj_f, dn, preferred_element_type=f32) * inv_temp

    # targets row-block: row-softmax of (z_j z_j.T + z_i z_i.T) / 2 * temperature
    sims = (lax.dot_general(zj_t, zj_f, dn, preferred_element_type=f32)
            + lax.dot_general(zi_t, zi_f, dn, preferred_element_type=f32)) * half_temp
    s_max = jnp.max(sims, axis=-1, keepdims=True)
    s_exp = jnp.exp(sims - s_max)
    targets = s_exp * (1.0 / jnp.sum(s_exp, axis=-1, keepdims=True))

    # row log-softmax of logits (rows are complete inside a tile)
    r_max = jnp.max(logits, axis=-1, keepdims=True)
    r_shift = logits - r_max
    row_lsm = r_shift - jnp.log(jnp.sum(jnp.exp(r_shift), axis=-1, keepdims=True))

    # fused per-tile contributions (column-wise partials, reduced on last tile)
    part_ref[...] += jnp.sum(targets * (row_lsm + logits), axis=0, keepdims=True)
    tmass_ref[...] += jnp.sum(targets, axis=0, keepdims=True)

    # online column logsumexp of logits across row tiles
    blk_max = jnp.max(logits, axis=0, keepdims=True)
    new_max = jnp.maximum(cmax_ref[...], blk_max)
    csum_ref[...] = (csum_ref[...] * jnp.exp(cmax_ref[...] - new_max)
                     + jnp.sum(jnp.exp(logits - new_max), axis=0, keepdims=True))
    cmax_ref[...] = new_max

    @pl.when(i == nsteps - 1)
    def _finalize():
        col_lse = cmax_ref[...] + jnp.log(csum_ref[...])  # (1, B) column logsumexp
        # sum(targets*colLSM) = sum(targets*logits) - Σ_j colLSE[j]*colsum[j]
        total = jnp.sum(part_ref[...] - col_lse * tmass_ref[...])
        out_ref[0, 0] = -total / (2.0 * batch)


def _pick_row_tile(batch):
    for cand in (256, 128, 64, 32, 16, 8):
        if batch % cand == 0:
            return cand
    return batch  # tiny / odd batch: single tile (block == full array, always legal)


def clip_loss(z_i, z_j, temperature=1.0, *, row_tile=None):
    """Pallas implementation of CLIPLoss.forward(z_i, z_j) -> scalar loss."""
    assert z_i.shape == z_j.shape and z_i.ndim == 2
    B, D = z_i.shape
    tq = _pick_row_tile(B) if row_tile is None else row_tile
    assert B % tq == 0, (B, tq)

    kernel = functools.partial(
        _clip_loss_kernel, temperature=float(temperature), batch=B)

    # Scoped-VMEM sizing: resident full embeddings + double-buffered row tiles
    # + lane-padded (1,B) accumulators + ~8 live (TQ,B) f32 temporaries.
    itemsize = jnp.dtype(z_i.dtype).itemsize
    resident = (2 * B * D + 4 * tq * D) * itemsize
    scratch = 4 * 8 * max(B, 128) * 4
    live = 8 * tq * max(B, 128) * 4
    vmem_limit = int(min(64 * 2**20, max(32 * 2**20, 2 * (resident + scratch + live))))

    grid_spec = pltpu.PrefetchScalarGridSpec(
        num_scalar_prefetch=0,
        grid=(B // tq,),
        in_specs=[
            pl.BlockSpec((tq, D), lambda i: (i, 0)),  # z_i row tile (streamed)
            pl.BlockSpec((tq, D), lambda i: (i, 0)),  # z_j row tile (streamed)
            pl.BlockSpec((B, D), lambda i: (0, 0)),   # z_i resident (Gram RHS)
            pl.BlockSpec((B, D), lambda i: (0, 0)),   # z_j resident (Gram RHS)
        ],
        out_specs=pl.BlockSpec(memory_space=pltpu.MemorySpace.SMEM),
        scratch_shapes=[
            pltpu.VMEM((1, B), jnp.float32),  # part:  Σ_rows targets*(rowLSM+logits)
            pltpu.VMEM((1, B), jnp.float32),  # tmass: Σ_rows targets
            pltpu.VMEM((1, B), jnp.float32),  # running column max of logits
            pltpu.VMEM((1, B), jnp.float32),  # running column Σ exp(logits - max)
        ],
    )

    # TODO(synk): the row axis carries the online column-LSE reduction, so it is
    # "arbitrary"; splitting it across v7x's two TensorCores would require
    # per-core partial (part/tmass/max/sumexp) outputs reduced outside the kernel.
    out = pl.pallas_call(
        kernel,
        out_shape=jax.ShapeDtypeStruct((1, 1), jnp.float32),
        grid_spec=grid_spec,
        compiler_params=pltpu.CompilerParams(
            dimension_semantics=("arbitrary",),
            vmem_limit_bytes=vmem_limit,
        ),
    )(z_i, z_j, z_i, z_j)
    return out[0, 0]


def _clip_loss_ref(z_i, z_j, temperature=1.0):
    """Pure-JAX reference reproducing the PyTorch semantics."""
    z_i = z_i.astype(jnp.float32)
    z_j = z_j.astype(jnp.float32)
    logits = (z_i @ z_j.T) / temperature
    images_sim = z_j @ z_j.T
    texts_sim = z_i @ z_i.T
    targets = jax.nn.softmax((images_sim + texts_sim) / 2.0 * temperature, axis=-1)
    texts_loss = jnp.sum(-targets * jax.nn.log_softmax(logits, axis=-1), axis=1)
    images_loss = jnp.sum(-targets.T * jax.nn.log_softmax(logits.T, axis=-1), axis=1)
    return jnp.mean((texts_loss + images_loss) / 2.0)


if __name__ == "__main__":
    key = jax.random.PRNGKey(0)
    k1, k2 = jax.random.split(key)
    B, D = 32, 32  # small embedding batch; row_tile=8 -> grid=(4,) exercises the
    #               multi-tile online column-logsumexp accumulation path.
    z_i = jax.random.normal(k1, (B, D), dtype=jnp.float32)
    z_j = jax.random.normal(k2, (B, D), dtype=jnp.float32)

    temperature = 1.0  # matches nn.Module default buffer init
    loss = clip_loss(z_i, z_j, temperature, row_tile=8)
    loss = jax.block_until_ready(loss)

    ref = _clip_loss_ref(z_i, z_j, temperature)
    assert jnp.allclose(loss, ref, rtol=1e-4, atol=1e-4), (loss, ref)

    print("KERNEL_OK")
</pallas_src>

<mosaic_0001>
module attributes {stable_mosaic.version = 11 : i64} {
  func.func @_clip_loss_kernel(%arg0: i32, %arg1: memref<8x32xf32, #tpu.memory_space<vmem>>, %arg2: memref<8x32xf32, #tpu.memory_space<vmem>>, %arg3: memref<32x32xf32, #tpu.memory_space<vmem>>, %arg4: memref<32x32xf32, #tpu.memory_space<vmem>>, %arg5: memref<1x1xf32, #tpu.memory_space<smem>>, %arg6: memref<1x32xf32, #tpu.memory_space<vmem>>, %arg7: memref<1x32xf32, #tpu.memory_space<vmem>>, %arg8: memref<1x32xf32, #tpu.memory_space<vmem>>, %arg9: memref<1x32xf32, #tpu.memory_space<vmem>>) attributes {dimension_semantics = [#tpu.dimension_semantics<arbitrary>], iteration_bounds = array<i64: 4>, scalar_prefetch = 0 : i64, scratch_operands = 4 : i64, tpu.core_type = #tpu.core_type<tc>, window_params = [{transform_indices = @transform_0, window_bounds = array<i64: 8, 32>}, {transform_indices = @transform_1, window_bounds = array<i64: 8, 32>}, {pipeline_mode = #tpu.pipeline_mode<synchronous>, transform_indices = @transform_2, window_bounds = array<i64: 32, 32>}, {pipeline_mode = #tpu.pipeline_mode<synchronous>, transform_indices = @transform_3, window_bounds = array<i64: 32, 32>}, {transform_indices = @transform_4, window_bounds = array<i64: 1, 1>}]} {
    %c0_i32 = arith.constant 0 : i32
    %0 = arith.cmpi eq, %arg0, %c0_i32 : i32
    %1 = arith.extui %0 : i1 to i32
    %c0_i32_0 = arith.constant 0 : i32
    %2 = arith.cmpi ne, %1, %c0_i32_0 : i32
    scf.if %2 {
      %cst_40 = arith.constant 0.000000e+00 : f32
      %68 = vector.broadcast %cst_40 : f32 to vector<1x32xf32>
      %c0_41 = arith.constant 0 : index
      %c0_42 = arith.constant 0 : index
      %69 = vector.load %arg6[%c0_41, %c0_42] : memref<1x32xf32, #tpu.memory_space<vmem>>, vector<1x32xf32>
      tpu.vector_store %arg6[%c0_41, %c0_42], %68 {strides = array<i32>} : memref<1x32xf32, #tpu.memory_space<vmem>>, vector<1x32xf32>,
      %c0_43 = arith.constant 0 : index
      %c0_44 = arith.constant 0 : index
      %70 = vector.load %arg7[%c0_43, %c0_44] : memref<1x32xf32, #tpu.memory_space<vmem>>, vector<1x32xf32>
      tpu.vector_store %arg7[%c0_43, %c0_44], %68 {strides = array<i32>} : memref<1x32xf32, #tpu.memory_space<vmem>>, vector<1x32xf32>,
      %c0_45 = arith.constant 0 : index
      %c0_46 = arith.constant 0 : index
      %71 = vector.load %arg9[%c0_45, %c0_46] : memref<1x32xf32, #tpu.memory_space<vmem>>, vector<1x32xf32>
      tpu.vector_store %arg9[%c0_45, %c0_46], %68 {strides = array<i32>} : memref<1x32xf32, #tpu.memory_space<vmem>>, vector<1x32xf32>,
      %cst_47 = arith.constant 0xFF800000 : f32
      %72 = vector.broadcast %cst_47 : f32 to vector<1x32xf32>
      %c0_48 = arith.constant 0 : index
      %c0_49 = arith.constant 0 : index
      %73 = vector.load %arg8[%c0_48, %c0_49] : memref<1x32xf32, #tpu.memory_space<vmem>>, vector<1x32xf32>
      tpu.vector_store %arg8[%c0_48, %c0_49], %72 {strides = array<i32>} : memref<1x32xf32, #tpu.memory_space<vmem>>, vector<1x32xf32>,
    } else {
    }
    %c0 = arith.constant 0 : index
    %c0_1 = arith.constant 0 : index
    %3 = vector.load %arg1[%c0, %c0_1] : memref<8x32xf32, #tpu.memory_space<vmem>>, vector<8x32xf32>
    %c0_2 = arith.constant 0 : index
    %c0_3 = arith.constant 0 : index
    %4 = vector.load %arg2[%c0_2, %c0_3] : memref<8x32xf32, #tpu.memory_space<vmem>>, vector<8x32xf32>
    %c0_4 = arith.constant 0 : index
    %c0_5 = arith.constant 0 : index
    %5 = vector.load %arg3[%c0_4, %c0_5] : memref<32x32xf32, #tpu.memory_space<vmem>>, vector<32x32xf32>
    %c0_6 = arith.constant 0 : index
    %c0_7 = arith.constant 0 : index
    %6 = vector.load %arg4[%c0_6, %c0_7] : memref<32x32xf32, #tpu.memory_space<vmem>>, vector<32x32xf32>
    %cst = arith.constant dense<0.000000e+00> : vector<8x32xf32>
    %7 = tpu.matmul %3, %6, %cst {dimension_numbers = #tpu.dot_dimension_numbers<[1], [1], [0], [0], [0, 0, 1, 0], [], []>} : vector<8x32xf32>, vector<32x32xf32>, vector<8x32xf32> -> vector<8x32xf32>
    %cst_8 = arith.constant 1.000000e+00 : f32
    %8 = vector.broadcast %cst_8 : f32 to vector<8x32xf32>
    %9 = arith.mulf %7, %8 : vector<8x32xf32>
    %cst_9 = arith.constant dense<0.000000e+00> : vector<8x32xf32>
    %10 = tpu.matmul %4, %6, %cst_9 {dimension_numbers = #tpu.dot_dimension_numbers<[1], [1], [0], [0], [0, 0, 1, 0], [], []>} : vector<8x32xf32>, vector<32x32xf32>, vector<8x32xf32> -> vector<8x32xf32>
    %cst_10 = arith.constant dense<0.000000e+00> : vector<8x32xf32>
    %11 = tpu.matmul %3, %5, %cst_10 {dimension_numbers = #tpu.dot_dimension_numbers<[1], [1], [0], [0], [0, 0, 1, 0], [], []>} : vector<8x32xf32>, vector<32x32xf32>, vector<8x32xf32> -> vector<8x32xf32>
    %12 = arith.addf %10, %11 : vector<8x32xf32>
    %cst_11 = arith.constant 5.000000e-01 : f32
    %13 = vector.broadcast %cst_11 : f32 to vector<8x32xf32>
    %14 = arith.mulf %12, %13 : vector<8x32xf32>
    %cst_12 = arith.constant dense<0xFF800000> : vector<8xf32>
    %15 = vector.multi_reduction <maximumf>, %14, %cst_12 [1] : vector<8x32xf32> to vector<8xf32>
    %16 = vector.shape_cast %15 : vector<8xf32> to vector<8x1xf32>
    %17 = vector.broadcast %16 : vector<8x1xf32> to vector<8x32xf32>
    %18 = arith.subf %14, %17 : vector<8x32xf32>
    %19 = math.exp %18 : vector<8x32xf32>
    %cst_13 = arith.constant dense<0.000000e+00> : vector<8xf32>
    %20 = vector.multi_reduction <add>, %19, %cst_13 [1] : vector<8x32xf32> to vector<8xf32>
    %21 = vector.shape_cast %20 : vector<8xf32> to vector<8x1xf32>
    %cst_14 = arith.constant 1.000000e+00 : f32
    %22 = vector.broadcast %cst_14 : f32 to vector<8x1xf32>
    %23 = arith.divf %22, %21 : vector<8x1xf32>
    %24 = vector.broadcast %23 : vector<8x1xf32> to vector<8x32xf32>
    %25 = arith.mulf %19, %24 : vector<8x32xf32>
    %cst_15 = arith.constant dense<0xFF800000> : vector<8xf32>
    %26 = vector.multi_reduction <maximumf>, %9, %cst_15 [1] : vector<8x32xf32> to vector<8xf32>
    %27 = vector.shape_cast %26 : vector<8xf32> to vector<8x1xf32>
    %28 = vector.broadcast %27 : vector<8x1xf32> to vector<8x32xf32>
    %29 = arith.subf %9, %28 : vector<8x32xf32>
    %30 = math.exp %29 : vector<8x32xf32>
    %cst_16 = arith.constant dense<0.000000e+00> : vector<8xf32>
    %31 = vector.multi_reduction <add>, %30, %cst_16 [1] : vector<8x32xf32> to vector<8xf32>
    %32 = vector.shape_cast %31 : vector<8xf32> to vector<8x1xf32>
    %33 = math.log %32 : vector<8x1xf32>
    %34 = vector.broadcast %33 : vector<8x1xf32> to vector<8x32xf32>
    %35 = arith.subf %29, %34 : vector<8x32xf32>
    %c0_17 = arith.constant 0 : index
    %c0_18 = arith.constant 0 : index
    %36 = vector.load %arg6[%c0_17, %c0_18] : memref<1x32xf32, #tpu.memory_space<vmem>>, vector<1x32xf32>
    %37 = arith.addf %35, %9 : vector<8x32xf32>
    %38 = arith.mulf %25, %37 : vector<8x32xf32>
    %cst_19 = arith.constant dense<0.000000e+00> : vector<32xf32>
    %39 = vector.multi_reduction <add>, %38, %cst_19 [0] : vector<8x32xf32> to vector<32xf32>
    %40 = vector.shape_cast %39 : vector<32xf32> to vector<1x32xf32>
    %41 = arith.addf %36, %40 : vector<1x32xf32>
    %c0_20 = arith.constant 0 : index
    %c0_21 = arith.constant 0 : index
    %42 = vector.load %arg6[%c0_20, %c0_21] : memref<1x32xf32, #tpu.memory_space<vmem>>, vector<1x32xf32>
    tpu.vector_store %arg6[%c0_20, %c0_21], %41 {strides = array<i32>} : memref<1x32xf32, #tpu.memory_space<vmem>>, vector<1x32xf32>,
    %c0_22 = arith.constant 0 : index
    %c0_23 = arith.constant 0 : index
    %43 = vector.load %arg7[%c0_22, %c0_23] : memref<1x32xf32, #tpu.memory_space<vmem>>, vector<1x32xf32>
    %cst_24 = arith.constant dense<0.000000e+00> : vector<32xf32>
    %44 = vector.multi_reduction <add>, %25, %cst_24 [0] : vector<8x32xf32> to vector<32xf32>
    %45 = vector.shape_cast %44 : vector<32xf32> to vector<1x32xf32>
    %46 = arith.addf %43, %45 : vector<1x32xf32>
    %c0_25 = arith.constant 0 : index
    %c0_26 = arith.constant 0 : index
    %47 = vector.load %arg7[%c0_25, %c0_26] : memref<1x32xf32, #tpu.memory_space<vmem>>, vector<1x32xf32>
    tpu.vector_store %arg7[%c0_25, %c0_26], %46 {strides = array<i32>} : memref<1x32xf32, #tpu.memory_space<vmem>>, vector<1x32xf32>,
    %cst_27 = arith.constant dense<0xFF800000> : vector<32xf32>
    %48 = vector.multi_reduction <maximumf>, %9, %cst_27 [0] : vector<8x32xf32> to vector<32xf32>
    %49 = vector.shape_cast %48 : vector<32xf32> to vector<1x32xf32>
    %c0_28 = arith.constant 0 : index
    %c0_29 = arith.constant 0 : index
    %50 = vector.load %arg8[%c0_28, %c0_29] : memref<1x32xf32, #tpu.memory_space<vmem>>, vector<1x32xf32>
    %51 = arith.maximumf %50, %49 : vector<1x32xf32>
    %c0_30 = arith.constant 0 : index
    %c0_31 = arith.constant 0 : index
    %52 = vector.load %arg9[%c0_30, %c0_31] : memref<1x32xf32, #tpu.memory_space<vmem>>, vector<1x32xf32>
    %c0_32 = arith.constant 0 : index
    %c0_33 = arith.constant 0 : index
    %53 = vector.load %arg8[%c0_32, %c0_33] : memref<1x32xf32, #tpu.memory_space<vmem>>, vector<1x32xf32>
    %54 = arith.subf %53, %51 : vector<1x32xf32>
    %55 = math.exp %54 : vector<1x32xf32>
    %56 = arith.mulf %52, %55 : vector<1x32xf32>
    %57 = vector.broadcast %51 : vector<1x32xf32> to vector<8x32xf32>
    %58 = arith.subf %9, %57 : vector<8x32xf32>
    %59 = math.exp %58 : vector<8x32xf32>
    %cst_34 = arith.constant dense<0.000000e+00> : vector<32xf32>
    %60 = vector.multi_reduction <add>, %59, %cst_34 [0] : vector<8x32xf32> to vector<32xf32>
    %61 = vector.shape_cast %60 : vector<32xf32> to vector<1x32xf32>
    %62 = arith.addf %56, %61 : vector<1x32xf32>
    %c0_35 = arith.constant 0 : index
    %c0_36 = arith.constant 0 : index
    %63 = vector.load %arg9[%c0_35, %c0_36] : memref<1x32xf32, #tpu.memory_space<vmem>>, vector<1x32xf32>
    tpu.vector_store %arg9[%c0_35, %c0_36], %62 {strides = array<i32>} : memref<1x32xf32, #tpu.memory_space<vmem>>, vector<1x32xf32>,
    %c0_37 = arith.constant 0 : index
    %c0_38 = arith.constant 0 : index
    %64 = vector.load %arg8[%c0_37, %c0_38] : memref<1x32xf32, #tpu.memory_space<vmem>>, vector<1x32xf32>
    tpu.vector_store %arg8[%c0_37, %c0_38], %51 {strides = array<i32>} : memref<1x32xf32, #tpu.memory_space<vmem>>, vector<1x32xf32>,
    %c3_i32 = arith.constant 3 : i32
    %65 = arith.cmpi eq, %arg0, %c3_i32 : i32
    %66 = arith.extui %65 : i1 to i32
    %c0_i32_39 = arith.constant 0 : i32
    %67 = arith.cmpi ne, %66, %c0_i32_39 : i32
    scf.if %67 {
      %c0_40 = arith.constant 0 : index
      %c0_41 = arith.constant 0 : index
      %68 = vector.load %arg8[%c0_40, %c0_41] : memref<1x32xf32, #tpu.memory_space<vmem>>, vector<1x32xf32>
      %c0_42 = arith.constant 0 : index
      %c0_43 = arith.constant 0 : index
      %69 = vector.load %arg9[%c0_42, %c0_43] : memref<1x32xf32, #tpu.memory_space<vmem>>, vector<1x32xf32>
      %70 = math.log %69 : vector<1x32xf32>
      %71 = arith.addf %68, %70 : vector<1x32xf32>
      %c0_44 = arith.constant 0 : index
      %c0_45 = arith.constant 0 : index
      %72 = vector.load %arg6[%c0_44, %c0_45] : memref<1x32xf32, #tpu.memory_space<vmem>>, vector<1x32xf32>
      %c0_46 = arith.constant 0 : index
      %c0_47 = arith.constant 0 : index
      %73 = vector.load %arg7[%c0_46, %c0_47] : memref<1x32xf32, #tpu.memory_space<vmem>>, vector<1x32xf32>
      %74 = arith.mulf %71, %73 : vector<1x32xf32>
      %75 = arith.subf %72, %74 : vector<1x32xf32>
      %76 = vector.shape_cast %75 : vector<1x32xf32> to vector<1x1x32xf32>
      %cst_48 = arith.constant dense<0.000000e+00> : vector<1xf32>
      %77 = vector.multi_reduction <add>, %76, %cst_48 [1, 2] : vector<1x1x32xf32> to vector<1xf32>
      %78 = vector.shape_cast %77 : vector<1xf32> to vector<1x1x1xf32>
      %79 = vector.extract %78[0, 0, 0] : f32 from vector<1x1x1xf32>
      %cst_49 = arith.constant 0.000000e+00 : f32
      %80 = arith.subf %cst_49, %79 : f32
      %cst_50 = arith.constant 6.400000e+01 : f32
      %81 = arith.divf %80, %cst_50 : f32
      %c0_51 = arith.constant 0 : index
      %c0_52 = arith.constant 0 : index
      %82 = memref.load %arg5[%c0_51, %c0_52] : memref<1x1xf32, #tpu.memory_space<smem>>
      memref.store %81, %arg5[%c0_51, %c0_52] : memref<1x1xf32, #tpu.memory_space<smem>>
    } else {
    }
    return
  }
  func.func @transform_0(%arg0: i32) -> (i32, i32) {
    %c0_i32 = arith.constant 0 : i32
    %c0_i32_0 = arith.constant 0 : i32
    return %arg0, %c0_i32 : i32, i32
  }
  func.func @transform_1(%arg0: i32) -> (i32, i32) {
    %c0_i32 = arith.constant 0 : i32
    %c0_i32_0 = arith.constant 0 : i32
    return %arg0, %c0_i32 : i32, i32
  }
  func.func @transform_2(%arg0: i32) -> (i32, i32) {
    %c0_i32 = arith.constant 0 : i32
    %c0_i32_0 = arith.constant 0 : i32
    %c0_i32_1 = arith.constant 0 : i32
    return %c0_i32, %c0_i32_0 : i32, i32
  }
  func.func @transform_3(%arg0: i32) -> (i32, i32) {
    %c0_i32 = arith.constant 0 : i32
    %c0_i32_0 = arith.constant 0 : i32
    %c0_i32_1 = arith.constant 0 : i32
    return %c0_i32, %c0_i32_0 : i32, i32
  }
  func.func @transform_4(%arg0: i32) -> (i32, i32) {
    %c0_i32 = arith.constant 0 : i32
    %c0_i32_0 = arith.constant 0 : i32
    %c0_i32_1 = arith.constant 0 : i32
    return %c0_i32, %c0_i32_0 : i32, i32
  }
}

</mosaic_0001>

<bundles_post_ra>
// kernel: tpu_custom_call.1
= control target key start
LH: loop header
LB: loop body
LE: loop exit
PB: predicated region body
PF: predicated region fallthrough
CT: control target
= control target key end

     0   :  { %9 = vsyncpa [#allocation7], 0  ;;  %s1143_s0 = inlined_call_operand.hbm [shape: f32[32,32], index: 0, kind: input, shape index: {}]   ;;  %s1144_s1 = inlined_call_operand.hbm [shape: f32[32,32], index: 1, kind: input, shape index: {}]   ;;  %s1145_s2 = inlined_call_operand.hbm [shape: f32[32,32], index: 2, kind: input, shape index: {}]   ;;  %s1146_s3 = inlined_call_operand.hbm [shape: f32[32,32], index: 3, kind: input, shape index: {}]   ;;  %s1147_s4 = inlined_call_operand.hbm [shape: f32[1,1], index: 4, kind: output, shape index: {}]  }
   0x1   :  { %11 = vsyncpa [#allocation7 + $0x1], 0 }
   0x2   :  { %12 = vsyncpa [#allocation10], 0 }
   0x3   :  { %14 = vsyncpa [#allocation10 + $0x1], 0 }
   0x4   :  { %15 = vsyncpa [#allocation13], 0 }
   0x5   :  { %16 = vsyncpa [#allocation8], 0  ;;  %s961_s15 = smov 0   ;;  %s963_s16 = smov 0  }
   0x6   :  { %s965_s17 = smov 0   ;;  %s967_s18 = smov 0  }
   0x7 LB: > { %s153_s21 = sshll.u32 %s1145_s2, 4  ;;  %s985_s22 = sadd.s32 4294967295, %s926_s18   ;;  %s926_s18 = sphi %s967_s18, %s1154_s18   ;;  %s922_s17 = sphi %s965_s17, %s1153_s17   ;;  %s918_s16 = sphi %s963_s16, %s1152_s16   ;;  %s914_s15 = sphi %s961_s15, %s1151_s15   ;;  %s154_s21 = int_to_ptr.hbm [resolvable:$true] %s153_s21 }
   0x8   : > { %p611_p0 = scmp.ge.s32.totalorder %s926_s18, 1  ;;  %p43_p1 = scmp.eq.s32.totalorder %s985_s22, 0 }
   0x9   : > { %p142_p2 = scmp.lt.s32.totalorder %s926_s18, 5  ;;  %p612_p3 = scmp.ne.s32.totalorder %s985_s22, 0 }
   0xa   : > { %s928_s24 = smov [#allocation11]   ;;  %s167_s28 = sshll.u32 %s1146_s3, 4  ;;  %s168_s28 = int_to_ptr.hbm [resolvable:$true] %s167_s28 }
   0xb   : > { %p991_p4 = pnand %p611_p0, %p142_p2  ;;  %s155_s25 = sshll.u32 %s928_s24, 4  ;;  %s156_s25 = int_to_ptr.vmem [resolvable:$true] %s155_s25 }
   0xc   : > { %s929_s29 = smov [#allocation12]   ;;  %s930_s5 = smov 128  }
   0xd   : > { %p665_p5 = pneg %p991_p4  ;;  %s169_s30 = sshll.u32 %s929_s29, 4  ;;  %s170_s30 = int_to_ptr.vmem [resolvable:$true] %s169_s30 }
   0xe   : > { %s931_s6 = smov 8   ;;  %s1003_s7 = sadd.s32 1, %s926_s18  }
   0xf   : > { %p666_p6 = pnand %p665_p5, %p43_p1  ;;  %s29_s8 = sadd.s32 1, %s922_s17 }
  0x10   : > { %s26_s9 = ssub.s32 %s926_s18, %s1003_s7  ;;  %p36_p7 = scmp.ne.s32.totalorder %s922_s17, %s918_s16 }
  0x11   : > { %668 = dma.hbm_to_vmem [thread:$0]  (!%p666_p6), %s154_s21, 512, %s156_s25, [#allocation10], %s930_s5, %s930_s5, %s931_s6  }
  0x12   : > { %671 = dma.hbm_to_vmem [thread:$0]  (!%p666_p6), %s168_s28, 512, %s170_s30, [#allocation13], %s930_s5, %s930_s5, %s931_s6  }
  0x13   : > { %p27_p8 = scmp.eq.s32.totalorder %s26_s9, 0  ;;  %p37_p9 = scmp.eq.s32.totalorder %s926_s18, 0 }
  0x14   : > { %p42_p10 = scmp.ne.s32.totalorder %s918_s16, %s914_s15  ;;  %p681_p11 = scmp.lt.s32.totalorder %s926_s18, 4 }
  0x15   : > { %s1015_s10 = scalar_select %p27_p8, %s922_s17, %s29_s8  }
  0x16   : > { %p38_p12 = por %p37_p9, %p36_p7  ;;  %p1019_p13 = por %p43_p1, %p42_p10 }
  0x17   : > { %s183_s12 = sand.u32 1, %s922_s17   ;;  %s616_s13 = sshll.u32 %s926_s18, 3 }
  0x18   : > { %s615_s14 = sshll.u32 %s183_s12, 3  ;;  %s191_s21 = scalar_lea.hbm %s1143_s0, %s616_s13 }
  0x19   : > { %s193_s24 = sshll.u32 %s191_s21, 4  ;;  %s187_s25 = scalar_lea.vmem [#allocation6], %s615_s14  ;;  %s194_s24 = int_to_ptr.hbm [resolvable:$true] %s193_s24 }
  0x1a   : > { %s195_s15 = sshll.u32 %s187_s25, 4  ;;  %p1030_p0 = pnand %p681_p11, %p38_p12  ;;  %s196_s15 = int_to_ptr.vmem [resolvable:$true] %s195_s15 }
  0x1b   : > { %s210_s29 = scalar_lea.hbm %s1144_s1, %s616_s13  ;;  %s202_s30 = sand.u32 1, %s926_s18  }
  0x1c   : > { %s184_s5 = scalar_lea.sflag [#allocation7], %s183_s12  ;;  %s802_s6 = sshra.s32 %s194_s24, 4  ;;  %s803_s6 = int_to_ptr.hbm [resolvable:$true] %s802_s6 }
  0x1d   : > { %s804_s8 = scalar_lea.hbm %s803_s6, 8  ;;  %p806_p5 = pneg %p1030_p0 }
  0x1e   : > { %p805_p2 = scmp.ne.s32.totalorder %s803_s6, %s804_s8  ;;  %s809_s20 = scalar_lea.hbm %s1143_s0, 32 }
  0x1f   : > { %p810_p8 = scmp.lt.s32.totalorder %s803_s6, %s1143_s0  ;;  %p811_p9 = scmp.lt.s32.totalorder %s809_s20, %s804_s8 }
  0x20   : > { %p807_p6 = pnand %p806_p5, %p805_p2 }
  0x21   : > { %p812_p10 = por %p811_p9, %p810_p8 }
  0x22   : > { %p808_p7 = pneg %p807_p6 }
  0x24   : > { %p813_p11 = pnand %p812_p10, %p808_p7 }
  0x26   : > { %816 = shalt.err (!%p813_p11)
}
  0x27   : > { %675 = dma.hbm_to_vmem [thread:$0]  (!%p1030_p0), %s194_s24, 128, %s196_s15, %s184_s5  }
  0x28   : > { %s212_s18 = sshll.u32 %s210_s29, 4  ;;  %s206_s12 = scalar_lea.vmem [#allocation9], %s615_s14  ;;  %s213_s18 = int_to_ptr.hbm [resolvable:$true] %s212_s18 }
  0x29   : > { %s214_s13 = sshll.u32 %s206_s12, 4  ;;  %s203_s27 = scalar_lea.sflag [#allocation10], %s202_s30  ;;  %s215_s13 = int_to_ptr.vmem [resolvable:$true] %s214_s13 }
  0x2a   : > { %s832_s28 = sshra.s32 %s213_s18, 4  ;;  %s839_s19 = scalar_lea.hbm %s1144_s1, 32  ;;  %s833_s28 = int_to_ptr.hbm [resolvable:$true] %s832_s28 }
  0x2b   : > { %s834_s9 = scalar_lea.hbm %s833_s28, 8  ;;  %p840_p7 = scmp.lt.s32.totalorder %s833_s28, %s1144_s1 }
  0x2c   : > { %p835_p12 = scmp.ne.s32.totalorder %s833_s28, %s834_s9  ;;  %p841_p8 = scmp.lt.s32.totalorder %s839_s19, %s834_s9 }
  0x2e   : > { %p837_p2 = pnand %p835_p12, %p806_p5  ;;  %p842_p9 = por %p841_p8, %p840_p7 }
  0x30   : > { %p838_p6 = pneg %p837_p2 }
  0x32   : > { %p843_p10 = pnand %p842_p9, %p838_p6 }
  0x34   : > { %846 = shalt.err (!%p843_p10)
}
  0x35   : > { %678 = dma.hbm_to_vmem [thread:$0]  (!%p1030_p0), %s213_s18, 128, %s215_s13, %s203_s27  }
  0x36   : > { %223 = sbr.rel (%p991_p4) target bundleno = 719 (0x2cf), region = 36  ;;  %s225_s14 = sand.u32 (!%p991_p4), 1, %s918_s16  }
  0x37   : > { %s1065_s15 = sshll.u32 (!%p991_p4), %s225_s14, 3  ;;  %s226_s29 = scalar_lea.sflag (!%p991_p4), [#allocation7], %s225_s14 }
  0x38   : > { %s229_s30 = scalar_lea.vmem (!%p991_p4), [#allocation6], %s1065_s15 }
  0x3b   : > { %893 = dma.done.wait (%p1019_p13), %s226_s29, 128  }
  0x3c   : > { %895 = vsyncadd (%p1019_p13), %s226_s29, 4294967168  ;;  %s235_s26 = sand.u32 1, %s985_s22   ;;  %s239_s23 = scalar_lea.vmem [#allocation9], %s1065_s15 }
  0x3d   : > { %s236_s5 = scalar_lea.sflag [#allocation10], %s235_s26 }
  0x3e   : > { %897 = dma.done.wait (%p1019_p13), %s236_s5, 128  }
  0x3f   : > { %899 = vsyncadd (%p1019_p13), %s236_s5, 4294967168 }
  0x40   : > { %901 = dma.done.wait (%p43_p1), [#allocation10], 512  }
  0x41   : > { %903 = vsyncadd (%p43_p1), [#allocation10], 4294966784 }
  0x42   : > { %905 = dma.done.wait (%p43_p1), [#allocation13], 512  }
  0x43   : > { %907 = vsyncadd (%p43_p1), [#allocation13], 4294966784  ;;  %278 = sbr.rel (%p612_p3) target bundleno = 77 (0x4d), region = 56 }
  0x48   : > { %vm279_vm0 = vcmask 253952   ;;  %v932_v0 = vmov 0.0   ;;  %v933_v1 = vmov -inf  }
  0x49   : > { %280 = vst.msk [vmem:[#allocation2] sm:$0x1] %vm279_vm0, %v932_v0 }
  0x4a   : > { %281 = vst.msk [vmem:[#allocation3] sm:$0x1] %vm279_vm0, %v932_v0 }
  0x4b   : > { %282 = vst.msk [vmem:[#allocation5] sm:$0x1] %vm279_vm0, %v932_v0 }
  0x4c   : > { %283 = vst.msk [vmem:[#allocation4] sm:$0x1] %vm279_vm0, %v933_v1 }
  0x4d PF: > { %v293_v2 = vld [vmem:[#allocation12 + $0x18] sm:$0xff]  ;;  %vm294_vm1 = vcmask 261120   ;;  %v292_v4 = vld [vmem:[#allocation12 + $0x10] sm:$0xff]  ;;  %v291_v6 = vld [vmem:[#allocation12 + $0x8] sm:$0xff]  ;;  %vm434_vm2 = vcmask 253952   ;;  %p640_p1 = scmp.ne.s32.totalorder %s985_s22, 3 }
  0x4e   : > { %v289_v3 = vld [vmem:[#allocation11 + $0x18] sm:$0xff]  ;;  %625 = vmatpush.xpose.msk.msra.mxu0 %vm294_vm1, %v293_v2  ;;  %635 = vmatpush.xpose.msk.msra.mxu2 %vm294_vm1, %v293_v2  ;;  %v288_v5 = vld [vmem:[#allocation11 + $0x10] sm:$0xff]  ;;  %v287_v7 = vld [vmem:[#allocation11 + $0x8] sm:$0xff] }
  0x4f   : > { %630 = vmatpush.xpose.msk.msra.mxu1 %vm294_vm1, %v289_v3  ;;  %v290_v8 = vld [vmem:[#allocation12] sm:$0xff]  ;;  %v285_v11 = vld [vmem:[%s239_s23] sm:$0xff] }
  0x50   : > { %v286_v9 = vld [vmem:[#allocation11] sm:$0xff] }
  0x51   : > { %v284_v10 = vld [vmem:[%s229_s30] sm:$0xff] }
  0x52   : > { %626 = vmatpush.xpose.msk.msra.mxu0 %vm294_vm1, %v292_v4  ;;  %636 = vmatpush.xpose.msk.msra.mxu2 %vm294_vm1, %v292_v4  ;;  %v454_v38 = vld [vmem:[#allocation5] sm:$0x1] }
  0x53   : > { %631 = vmatpush.xpose.msk.msra.mxu1 %vm294_vm1, %v288_v5  ;;  %v452_v24 = vld [vmem:[#allocation4] sm:$0x1] }
  0x56   : > { %627 = vmatpush.xpose.msk.msra.mxu0 %vm294_vm1, %v291_v6  ;;  %637 = vmatpush.xpose.msk.msra.mxu2 %vm294_vm1, %v291_v6 }
  0x57   : > { %632 = vmatpush.xpose.msk.msra.mxu1 %vm294_vm1, %v287_v7 }
  0x5a   : > { %628 = vmatpush.xpose.msk.msra.mxu0 %vm294_vm1, %v290_v8  ;;  %638 = vmatpush.xpose.msk.msra.mxu2 %vm294_vm1, %v290_v8 }
  0x5b   : > { %633 = vmatpush.xpose.msk.msra.mxu1 %vm294_vm1, %v286_v9 }
  0x5d   : > { %629 = vmatmul.msk.f32.vlgmr.msra.gmra.mxu0 %vm294_vm1, %v284_v10  ;;  %639 = vmatmul.msk.f32.vlgmr.msra.gmra.mxu2 %vm294_vm1, %v285_v11 }
  0x5e   : > { %634 = vmatmul.msk.f32.vlgmr.msra.gmra.mxu1 %vm294_vm1, %v284_v10 }
  0xda   : > { %v1107_v12 = vpop.f32.mrf.mxu0 }
  0xdb   : > { %v411_v13 = vsel %vm294_vm1, %v1107_v12, -inf  ;;  %v359_v15 = vpop.f32.mrf.mxu1 }
  0xdc   : > { %v446_v14 = vrot.slane %v411_v13, 4 }
  0xde   : > { %v447_v16 = vmax.f32 %v411_v13, %v446_v14 }
  0xe0   : > { %v382_v17 = vpop.f32.mrf.mxu2  ;;  %v448_v18 = vrot.slane %v447_v16, 2 }
  0xe1   : > { %v383_v19 = vadd.f32 %v382_v17, %v359_v15 }
  0xe2   : > { %v449_v20 = vmax.f32 %v447_v16, %v448_v18 }
  0xe3   : > { %v385_v21 = vmul.f32 0.5, %v383_v19  ;;  %v436_v19 = vld [vmem:[#allocation3] sm:$0x1] }
  0xe4   : > { %v450_v22 = vrot.slane %v449_v20, 1 }
  0xe5   : > { %v386_v23 = vsel %vm294_vm1, %v385_v21, -inf }
  0xe6   : > { %387 = vmax.xlane.f32.xlu0 %v386_v23  ;;  %v451_v25 = vmax.f32 %v449_v20, %v450_v22 }
  0xe8   : > { %v453_v26 = vmax.f32 %v452_v24, %v451_v25 }
  0xea   : > { %v460_v27 = vperm.slane %v453_v26, 0  ;;  %474 = vst.msk [vmem:[#allocation4] sm:$0x1] %vm434_vm2, %v453_v26  ;;  %v455_v30 = vsub.f32 %v452_v24, %v453_v26  ;;  %v423_v24 = vld [vmem:[#allocation2] sm:$0x1] }
  0xec   : > { %v462_v28 = vsub.f32 %v1107_v12, %v460_v27  ;;  %v456_v31 = vmul.f32 1.442695, %v455_v30 }
  0xee   : > { %412 = vmax.xlane.f32.xlu0 %v411_v13  ;;  %v463_v29 = vmul.f32 1.442695, %v462_v28 }
  0xf0   : > { %726 = vpow2.f32 %v463_v29 }
  0xf1   : > { %728 = vpow2.f32 %v456_v31 }
  0xf6   : > { %v727_v32 = vpop.eup %726 }
  0xf7   : > { %v465_v33 = vsel %vm294_vm1, %v727_v32, 0.0  ;;  %v729_v37 = vpop.eup %728 }
  0xf8   : > { %v466_v34 = vrot.slane %v465_v33, 4  ;;  %v458_v40 = vmul.f32 %v729_v37, %v454_v38 }
  0xfa   : > { %v467_v35 = vadd.f32 %v466_v34, %v465_v33 }
  0xfc   : > { %v468_v36 = vrot.slane %v467_v35, 2 }
  0xfe   : > { %v469_v39 = vadd.f32 %v468_v36, %v467_v35 }
 0x100   : > { %v470_v41 = vrot.slane %v469_v39, 1 }
 0x102   : > { %v471_v42 = vadd.f32 %v470_v41, %v469_v39 }
 0x104   : > { %v472_v43 = vadd.f32 %v471_v42, %v458_v40 }
 0x106   : > { %473 = vst.msk [vmem:[#allocation5] sm:$0x1] %vm434_vm2, %v472_v43 }
 0x159   : > { %v388_v44 = vpop.xlane.xlu0 %387 }
 0x15a   : > { %v389_v45 = vsub.f32 %v385_v21, %v388_v44 }
 0x15c   : > { %v390_v46 = vmul.f32 1.442695, %v389_v45 }
 0x15e   : > { %730 = vpow2.f32 %v390_v46 }
 0x161   : > { %v413_v47 = vpop.xlane.xlu0 %412 }
 0x162   : > { %v414_v48 = vsub.f32 %v1107_v12, %v413_v47 }
 0x164   : > { %v731_v49 = vpop.eup %730  ;;  %v415_v50 = vmul.f32 1.442695, %v414_v48 }
 0x165   : > { %v392_v51 = vsel %vm294_vm1, %v731_v49, 0.0 }
 0x166   : > { %732 = vpow2.f32 %v415_v50  ;;  %393 = vadd.xlane.f32.xlu1 %v392_v51 }
 0x16c   : > { %v733_v52 = vpop.eup %732 }
 0x16d   : > { %v417_v53 = vsel %vm294_vm1, %v733_v52, 0.0 }
 0x16e   : > { %418 = vadd.xlane.f32.xlu1 %v417_v53 }
 0x1d9   : > { %v394_v54 = vpop.xlane.xlu1 %393 }
 0x1da   : > { %734 = vrcp.f32 %v394_v54  ;;  %v406_v59 = vand.u32 2147483648, %v394_v54  ;;  %v404_v61 = vand.u32 2147483647, %v394_v54  ;;  %vm400_vm4 = vweird.f32 %v394_v54 }
 0x1dc   : > { %v407_v0 = vor.u32 1.1754944e-38, %v406_v59  ;;  %vm405_vm6 = vcmp.eq.f32.partialorder %v404_v61, 8.507059e+37 }
 0x1e0   : > { %v735_v55 = vpop.eup %734 }
 0x1e1   : > { %v396_v56 = vmul.f32 %v735_v55, %v394_v54  ;;  %v419_v57 = vpop.xlane.xlu1 %418  ;;  %vm401_vm3 = vweird.f32 %v735_v55 }
 0x1e2   : > { %736 = vlog2.f32 %v419_v57  ;;  %vm402_vm5 = vmor %vm400_vm4, %vm401_vm3 }
 0x1e3   : > { %v397_v58 = vsub.f32 1.0, %v396_v56 }
 0x1e5   : > { %v398_v60 = vmul.f32 %v735_v55, %v397_v58 }
 0x1e7   : > { %v399_v62 = vadd.f32 %v735_v55, %v398_v60 }
 0x1e8   : > { %v737_v63 = vpop.eup %736 }
 0x1e9   : > { %v403_v1 = vsel %vm402_vm5, %v735_v55, %v399_v62  ;;  %v421_v2 = vmul.f32 0.6931472, %v737_v63 }
 0x1ea   : > { %v408_v3 = vsel %vm405_vm6, %v407_v0, %v403_v1 }
 0x1eb   : > { %v410_v4 = vmul.f32 %v731_v49, %v408_v3  ;;  %v422_v5 = vsub.f32 %v414_v48, %v421_v2 }
 0x1ed   : > { %v437_v6 = vsel %vm294_vm1, %v410_v4, 0.0  ;;  %v424_v7 = vadd.f32 %v422_v5, %v1107_v12 }
 0x1ee   : > { %v438_v8 = vrot.slane %v437_v6, 4 }
 0x1ef   : > { %v425_v9 = vmul.f32 %v424_v7, %v410_v4 }
 0x1f0   : > { %v439_v10 = vadd.f32 %v438_v8, %v437_v6 }
 0x1f1   : > { %v426_v11 = vsel %vm294_vm1, %v425_v9, 0.0 }
 0x1f2   : > { %v440_v13 = vrot.slane %v439_v10, 2  ;;  %v427_v14 = vrot.slane %v426_v11, 4 }
 0x1f4   : > { %v441_v15 = vadd.f32 %v440_v13, %v439_v10  ;;  %v428_v16 = vadd.f32 %v427_v14, %v426_v11 }
 0x1f6   : > { %v442_v17 = vrot.slane %v441_v15, 1  ;;  %v429_v18 = vrot.slane %v428_v16, 2 }
 0x1f8   : > { %v443_v20 = vadd.f32 %v442_v17, %v441_v15  ;;  %v430_v21 = vadd.f32 %v429_v18, %v428_v16 }
 0x1fa   : > { %v444_v22 = vadd.f32 %v443_v20, %v436_v19  ;;  %v431_v23 = vrot.slane %v430_v21, 1 }
 0x1fc   : > { %445 = vst.msk [vmem:[#allocation3] sm:$0x1] %vm434_vm2, %v444_v22  ;;  %v432_v12 = vadd.f32 %v431_v23, %v430_v21  ;;  %478 = sbr.rel (%p640_p1) target bundleno = 713 (0x2c9), region = 60 }
 0x1fe   : > { %v433_v25 = vadd.f32 %v432_v12, %v423_v24 }
 0x200   : > { %435 = vst.msk [vmem:[#allocation2] sm:$0x1] %vm434_vm2, %v433_v25 }
 0x201   : > { %v480_v26 = vld [vmem:[#allocation5] sm:$0x1]  ;;  %v479_v28 = vld [vmem:[#allocation4] sm:$0x1]  ;;  %v934_v36 = vmov 64.0  }
 0x202   : > { %738 = vlog2.f32 %v480_v26 }
 0x203   : > { %v485_v30 = vld [vmem:[#allocation3] sm:$0x1]  ;;  %740 = vrcp.f32 %v934_v36 }
 0x207   : > { %v484_v32 = vld [vmem:[#allocation2] sm:$0x1] }
 0x208   : > { %v739_v27 = vpop.eup %738 }
 0x209   : > { %v482_v29 = vmul.f32 0.6931472, %v739_v27  ;;  %v741_v37 = vpop.eup %740 }
 0x20a   : > { %v500_v38 = vmul.f32 64.0, %v741_v37  ;;  %vm504_vm7 = vweird.f32 %v741_v37 }
 0x20b   : > { %v483_v31 = vadd.f32 %v482_v29, %v479_v28 }
 0x20c   : > { %v501_v39 = vsub.f32 1.0, %v500_v38 }
 0x20d   : > { %v486_v33 = vmul.f32 %v485_v30, %v483_v31 }
 0x20e   : > { %v502_v43 = vmul.f32 %v741_v37, %v501_v39 }
 0x20f   : > { %v487_v34 = vsub.f32 %v484_v32, %v486_v33 }
 0x210   : > { %v503_v46 = vadd.f32 %v741_v37, %v502_v43 }
 0x211   : > { %v488_v35 = vsel %vm434_vm2, %v487_v34, 0.0 }
 0x212   : > { %489 = vadd.xlane.f32.xlu0 %v488_v35  ;;  %v505_v49 = vsel %vm504_vm7, %v741_v37, %v503_v46 }
 0x285   : > { %v490_v40 = vpop.xlane.xlu0 %489 }
 0x286   : > { %v491_v41 = vrot.slane %v490_v40, 4 }
 0x288   : > { %v492_v42 = vadd.f32 %v491_v41, %v490_v40 }
 0x28a   : > { %v493_v44 = vrot.slane %v492_v42, 2 }
 0x28c   : > { %v494_v45 = vadd.f32 %v493_v44, %v492_v42 }
 0x28e   : > { %v495_v47 = vrot.slane %v494_v45, 1 }
 0x290   : > { %v496_v48 = vadd.f32 %v495_v47, %v494_v45 }
 0x292   : > { %645 = vpush %v496_v48 }
 0x293   : > { %647 = vpush %v505_v49 }
 0x2c3   : > { %s646_s11 = spop %645 }
 0x2c4   : > { %s498_s21 = ssub.f32 0.0, %s646_s11  ;;  %s648_s25 = spop %647 }
 0x2c6   : > { %s507_s18 = smul.f32 %s648_s25, %s498_s21 }
 0x2c8   : > { %509 = sst [smem:[#allocation14]] %s507_s18 }
 0x2c9 PF: > { %p684_p3 = scmp.eq.s32.totalorder %s985_s22, 3  ;;  %s516_s27 = sshll.u32 %s1147_s4, 4  ;;  %s517_s27 = int_to_ptr.hbm [resolvable:$true] %s516_s27 }
 0x2ca   : > { %s935_s28 = smov [#allocation14]  }
 0x2cb   : > { %662 = dma.smem_to_hbm (%p684_p3), %s935_s28, 16, %s517_s27, [#allocation8]  }
 0x2cc   : > { %909 = dma.done.wait (%p684_p3), [#allocation8], 16  }
 0x2cd   : > { %911 = vsyncadd (%p684_p3), [#allocation8], 4294967280 }
 0x2ce   : > { %525 = sfence }
 0x2cf PF: > { %p19_p4 = scmp.ge.s32.totalorder %s1003_s7, 6   ;;  %s1151_s15 = smov %s918_s16 }
 0x2d0   : > { %s1152_s16 = smov %s922_s17  ;;  %s1153_s17 = smov %s1015_s10 }
 0x2d1   : > { %s1154_s18 = smov %s1003_s7  ;;  %21 = sbr.rel (!%p19_p4) target bundleno = 7 (0x7), region = 103 }
 0x2d6   :  { %531 = vsyncpa [#allocation7], 1 }
 0x2d7   :  { %533 = vsyncpa [#allocation7 + $0x1], 1 }
 0x2d8   :  { %534 = vsyncpa [#allocation10], 1 }
 0x2d9   :  { %536 = vsyncpa [#allocation10 + $0x1], 1 }
 0x2da   :  { %537 = vsyncpa [#allocation13], 1 }
 0x2db   :  { %538 = vsyncpa [#allocation8], 1 }
 0x2dc   :  { %540 = vsyncpa [#allocation8 + $0x1], 1 }

</bundles_post_ra>
